<compile_context>
chip_gen: v7x
topology: tpu7x:2x2x1
jax: 0.10.0
libtpu: 0.0.40
codegen_flags: <defaults>
</compile_context>

<pallas_src>
import jax
import jax.numpy as jnp
from jax.experimental import pallas as pl
from jax.experimental.pallas import tpu as pltpu

BN_EPS = 1e-5          # PyTorch BatchNorm default
LANE = 128             # TPU lane width


def _round_up(x, m):
    return (x + m - 1) // m * m


def _pick_tile_hw(hw, target=1024):
    """Largest multiple-of-8 divisor of hw that is <= target (fallback: hw)."""
    best = hw
    t = 8
    while t <= min(hw, target):
        if hw % t == 0:
            best = t
        t += 8
    return best


def im2col_3x3_pad1(x_nchw):
    """3x3 / pad-1 patches -> (N, H*W, C_in*9); column order (C_in, KH, KW)
    matches PyTorch's Conv2d weight flattening.
    # TODO(synk): for large H*W the 9x-expanded patch tensor should be built
    # inside the kernel from a halo'd NHWC row window (manual DMA) instead of
    # being materialized in HBM; kept as cheap XLA glue at these demo shapes.
    """
    n, c, h, w = x_nchw.shape
    xp = jnp.pad(x_nchw, ((0, 0), (0, 0), (1, 1), (1, 1)))
    taps = [xp[:, :, i:i + h, j:j + w] for i in range(3) for j in range(3)]
    p = jnp.stack(taps, axis=2)               # (N, C, 9, H, W)
    p = p.transpose(0, 3, 4, 1, 2)            # (N, H, W, C, 9)
    return p.reshape(n, h * w, c * 9)


# ----------------------------------------------------------------------------
# Fused kernel: conv matmul (BN scale folded into W) + bias + ReLU
#               + global-average-pool accumulator + linear head
# Grid: (N, HW // TILE_HW); outputs one (1, NCLS_PAD) logits row per image.
# ----------------------------------------------------------------------------
def _make_fused_kernel(inv_hw):
    def kernel(p_ref, w_ref, b_ref, fcw_ref, fcb_ref, o_ref, acc_ref):
        # p_ref:   (1, TILE_HW, Kd)   im2col patches for this image / HW tile
        # w_ref:   (Kd, COUT_PAD)     conv weights with BN scale folded in
        # b_ref:   (1, COUT_PAD)      folded BN bias (beta - mean*scale)
        # fcw_ref: (COUT_PAD, NCLS_PAD), fcb_ref: (1, NCLS_PAD)
        # o_ref:   (1, 1, NCLS_PAD)   logits for this image (revisited block)
        # acc_ref: (1, COUT_PAD)      f32 GAP accumulator (VMEM scratch)
        t = pl.program_id(1)

        @pl.when(t == 0)
        def _init():
            acc_ref[...] = jnp.zeros_like(acc_ref)

        # conv tile on the MXU; frozen-BN affine is scale-folded + one bias add
        conv = jnp.dot(p_ref[0], w_ref[...], preferred_element_type=jnp.float32)
        feat = jnp.maximum(conv + b_ref[...], 0.0)           # (TILE_HW, COUT_PAD)

        # partial GAP: column sums via MXU ones-vector matmul (keeps the
        # reduction off the XLU / critical path)
        ones_row = jnp.ones((1, feat.shape[0]), jnp.float32)
        acc_ref[...] += jnp.dot(ones_row, feat,
                                preferred_element_type=jnp.float32)

        @pl.when(t == pl.num_programs(1) - 1)
        def _finalize():
            pooled = acc_ref[...] * inv_hw                   # mean over H*W
            logits = jnp.dot(pooled, fcw_ref[...],
                             preferred_element_type=jnp.float32) + fcb_ref[...]
            o_ref[0] = logits

    return kernel


def freezed_bn_model_forward(x_nchw, params, *, tile_hw=None,
                             matmul_dtype=jnp.float32):
    n, c_in, h, w = x_nchw.shape
    hw = h * w
    c_out = params["conv_w"].shape[0]
    num_classes = params["fc_w"].shape[0]
    cout_pad = _round_up(c_out, LANE)        # lane-dense channel axis
    ncls_pad = _round_up(num_classes, LANE)  # lane-dense logits axis

    if tile_hw is None or hw % tile_hw != 0:
        tile_hw = _pick_tile_hw(hw)
    nt = hw // tile_hw

    # ---------------- wrapper-side prep (cheap O(Kd*Cout) glue) ----------------
    patches = im2col_3x3_pad1(x_nchw)                         # (N, HW, Kd)
    kd = patches.shape[-1]

    # Fold frozen (eval-mode) BN into the conv weights + a single bias row.
    scale = params["bn_gamma"] * jax.lax.rsqrt(params["bn_running_var"] + BN_EPS)
    bias = params["bn_beta"] - params["bn_running_mean"] * scale

    w_mat = params["conv_w"].reshape(c_out, kd).T * scale[None, :]   # (Kd, Cout)
    w_mat = jnp.pad(w_mat, ((0, 0), (0, cout_pad - c_out)))
    bias_row = jnp.pad(bias, (0, cout_pad - c_out)).reshape(1, cout_pad)

    fc_w = jnp.pad(params["fc_w"].T,
                   ((0, cout_pad - c_out), (0, ncls_pad - num_classes)))
    fc_b = jnp.pad(params["fc_b"],
                   (0, ncls_pad - num_classes)).reshape(1, ncls_pad)

    # Optional bf16 matmul operands (v6e/v7x); f32 accumulation & epilogue.
    patches = patches.astype(matmul_dtype)
    w_mat = w_mat.astype(matmul_dtype)

    kernel = _make_fused_kernel(1.0 / float(hw))

    out = pl.pallas_call(
        kernel,
        out_shape=jax.ShapeDtypeStruct((n, 1, ncls_pad), jnp.float32),
        grid=(n, nt),
        in_specs=[
            pl.BlockSpec((1, tile_hw, kd), lambda i, t: (i, t, 0)),
            pl.BlockSpec((kd, cout_pad), lambda i, t: (0, 0)),
            pl.BlockSpec((1, cout_pad), lambda i, t: (0, 0)),
            pl.BlockSpec((cout_pad, ncls_pad), lambda i, t: (0, 0)),
            pl.BlockSpec((1, ncls_pad), lambda i, t: (0, 0)),
        ],
        out_specs=pl.BlockSpec((1, 1, ncls_pad), lambda i, t: (i, 0, 0)),
        scratch_shapes=[pltpu.VMEM((1, cout_pad), jnp.float32)],
        compiler_params=pltpu.CompilerParams(
            dimension_semantics=("parallel", "arbitrary"),
            vmem_limit_bytes=32 * 1024 * 1024,
        ),
    )(patches, w_mat, bias_row, fc_w, fc_b)

    return out.reshape(n, ncls_pad)[:, :num_classes]


# ----------------------------------------------------------------------------
# Plain-JAX reference (frozen/eval-mode BN), used as a correctness check.
# ----------------------------------------------------------------------------
def reference_forward(x_nchw, params):
    conv = jax.lax.conv_general_dilated(
        x_nchw, params["conv_w"], window_strides=(1, 1),
        padding=((1, 1), (1, 1)),
        dimension_numbers=("NCHW", "OIHW", "NCHW"),
        precision=jax.lax.Precision.HIGHEST)
    g = params["bn_gamma"][None, :, None, None]
    b = params["bn_beta"][None, :, None, None]
    m = params["bn_running_mean"][None, :, None, None]
    v = params["bn_running_var"][None, :, None, None]
    feat = jnp.maximum((conv - m) * jax.lax.rsqrt(v + BN_EPS) * g + b, 0.0)
    pooled = feat.mean(axis=(2, 3))
    return jnp.dot(pooled, params["fc_w"].T,
                   precision=jax.lax.Precision.HIGHEST) + params["fc_b"]


def init_params(key, c_in=4, c_out=8, num_classes=10):
    ks = jax.random.split(key, 6)
    return {
        "conv_w": 0.1 * jax.random.normal(ks[0], (c_out, c_in, 3, 3), jnp.float32),
        "bn_gamma": 1.0 + 0.1 * jax.random.normal(ks[1], (c_out,), jnp.float32),
        "bn_beta": 0.1 * jax.random.normal(ks[2], (c_out,), jnp.float32),
        "bn_running_mean": 0.1 * jax.random.normal(ks[3], (c_out,), jnp.float32),
        "bn_running_var": jax.random.uniform(ks[4], (c_out,), jnp.float32, 0.5, 1.5),
        "fc_w": 0.1 * jax.random.normal(ks[5], (num_classes, c_out), jnp.float32),
        "fc_b": jnp.zeros((num_classes,), jnp.float32),
    }


if __name__ == "__main__":
    key = jax.random.PRNGKey(0)
    k_x, k_p = jax.random.split(key)

    N, C, H, W = 2, 4, 16, 16                                 # small NCHW input
    x = jax.random.normal(k_x, (N, C, H, W), jnp.float32)
    params = init_params(k_p, c_in=C, c_out=8, num_classes=10)

    # tile_hw=128 exercises the multi-tile GAP-accumulation path (H*W = 256).
    fwd = jax.jit(lambda xx, pp: freezed_bn_model_forward(xx, pp, tile_hw=128))
    logits = fwd(x, params)
    jax.block_until_ready(logits)

    assert logits.shape == (N, 10)

    ref = reference_forward(x, params)
    err = float(jnp.max(jnp.abs(logits - ref)))
    assert err < 3e-3, f"mismatch vs reference: max abs err = {err}"

    print("KERNEL_OK")
</pallas_src>

<mosaic_0001>
module attributes {stable_mosaic.version = 11 : i64} {
  func.func @kernel(%arg0: i32, %arg1: i32, %arg2: memref<1x128x36xf32, #tpu.memory_space<vmem>>, %arg3: memref<36x128xf32, #tpu.memory_space<vmem>>, %arg4: memref<1x128xf32, #tpu.memory_space<vmem>>, %arg5: memref<128x128xf32, #tpu.memory_space<vmem>>, %arg6: memref<1x128xf32, #tpu.memory_space<vmem>>, %arg7: memref<1x1x128xf32, #tpu.memory_space<vmem>>, %arg8: memref<1x128xf32, #tpu.memory_space<vmem>>) attributes {dimension_semantics = [#tpu.dimension_semantics<parallel>, #tpu.dimension_semantics<arbitrary>], iteration_bounds = array<i64: 2, 2>, scalar_prefetch = 0 : i64, scratch_operands = 1 : i64, tpu.core_type = #tpu.core_type<tc>, window_params = [{transform_indices = @transform_0, window_bounds = array<i64: 1, 128, 36>}, {pipeline_mode = #tpu.pipeline_mode<synchronous>, transform_indices = @transform_1, window_bounds = array<i64: 36, 128>}, {pipeline_mode = #tpu.pipeline_mode<synchronous>, transform_indices = @transform_2, window_bounds = array<i64: 1, 128>}, {pipeline_mode = #tpu.pipeline_mode<synchronous>, transform_indices = @transform_3, window_bounds = array<i64: 128, 128>}, {pipeline_mode = #tpu.pipeline_mode<synchronous>, transform_indices = @transform_4, window_bounds = array<i64: 1, 128>}, {transform_indices = @transform_5, window_bounds = array<i64: 1, 1, 128>}]} {
    %c0_i32 = arith.constant 0 : i32
    %0 = arith.cmpi eq, %arg1, %c0_i32 : i32
    %1 = arith.extui %0 : i1 to i32
    %c0_i32_0 = arith.constant 0 : i32
    %2 = arith.cmpi ne, %1, %c0_i32_0 : i32
    scf.if %2 {
      %cst_15 = arith.constant 0.000000e+00 : f32
      %20 = vector.broadcast %cst_15 : f32 to vector<1x128xf32>
      %c0_16 = arith.constant 0 : index
      %c0_17 = arith.constant 0 : index
      %21 = vector.load %arg8[%c0_16, %c0_17] : memref<1x128xf32, #tpu.memory_space<vmem>>, vector<1x128xf32>
      tpu.vector_store %arg8[%c0_16, %c0_17], %20 {strides = array<i32>} : memref<1x128xf32, #tpu.memory_space<vmem>>, vector<1x128xf32>,
    } else {
    }
    %c0 = arith.constant 0 : index
    %c0_1 = arith.constant 0 : index
    %c0_2 = arith.constant 0 : index
    %3 = vector.load %arg2[%c0, %c0_1, %c0_2] : memref<1x128x36xf32, #tpu.memory_space<vmem>>, vector<1x128x36xf32>
    %4 = vector.shape_cast %3 : vector<1x128x36xf32> to vector<128x36xf32>
    %c0_3 = arith.constant 0 : index
    %c0_4 = arith.constant 0 : index
    %5 = vector.load %arg3[%c0_3, %c0_4] : memref<36x128xf32, #tpu.memory_space<vmem>>, vector<36x128xf32>
    %cst = arith.constant dense<0.000000e+00> : vector<128x128xf32>
    %6 = tpu.matmul %4, %5, %cst {dimension_numbers = #tpu.dot_dimension_numbers<[1], [0], [0], [1], [0, 0, 1, 1], [], []>} : vector<128x36xf32>, vector<36x128xf32>, vector<128x128xf32> -> vector<128x128xf32>
    %c0_5 = arith.constant 0 : index
    %c0_6 = arith.constant 0 : index
    %7 = vector.load %arg4[%c0_5, %c0_6] : memref<1x128xf32, #tpu.memory_space<vmem>>, vector<1x128xf32>
    %8 = vector.broadcast %7 : vector<1x128xf32> to vector<128x128xf32>
    %9 = arith.addf %6, %8 : vector<128x128xf32>
    %cst_7 = arith.constant 0.000000e+00 : f32
    %10 = vector.broadcast %cst_7 : f32 to vector<128x128xf32>
    %11 = arith.maximumf %9, %10 : vector<128x128xf32>
    %cst_8 = arith.constant 1.000000e+00 : f32
    %12 = vector.broadcast %cst_8 : f32 to vector<1x128xf32>
    %c0_9 = arith.constant 0 : index
    %c0_10 = arith.constant 0 : index
    %13 = vector.load %arg8[%c0_9, %c0_10] : memref<1x128xf32, #tpu.memory_space<vmem>>, vector<1x128xf32>
    %cst_11 = arith.constant dense<0.000000e+00> : vector<1x128xf32>
    %14 = tpu.matmul %12, %11, %cst_11 {dimension_numbers = #tpu.dot_dimension_numbers<[1], [0], [0], [1], [0, 0, 1, 1], [], []>} : vector<1x128xf32>, vector<128x128xf32>, vector<1x128xf32> -> vector<1x128xf32>
    %15 = arith.addf %13, %14 : vector<1x128xf32>
    %c0_12 = arith.constant 0 : index
    %c0_13 = arith.constant 0 : index
    %16 = vector.load %arg8[%c0_12, %c0_13] : memref<1x128xf32, #tpu.memory_space<vmem>>, vector<1x128xf32>
    tpu.vector_store %arg8[%c0_12, %c0_13], %15 {strides = array<i32>} : memref<1x128xf32, #tpu.memory_space<vmem>>, vector<1x128xf32>,
    %c1_i32 = arith.constant 1 : i32
    %17 = arith.cmpi eq, %arg1, %c1_i32 : i32
    %18 = arith.extui %17 : i1 to i32
    %c0_i32_14 = arith.constant 0 : i32
    %19 = arith.cmpi ne, %18, %c0_i32_14 : i32
    scf.if %19 {
      %c0_15 = arith.constant 0 : index
      %c0_16 = arith.constant 0 : index
      %20 = vector.load %arg8[%c0_15, %c0_16] : memref<1x128xf32, #tpu.memory_space<vmem>>, vector<1x128xf32>
      %cst_17 = arith.constant 3.906250e-03 : f32
      %21 = vector.broadcast %cst_17 : f32 to vector<1x128xf32>
      %22 = arith.mulf %20, %21 : vector<1x128xf32>
      %c0_18 = arith.constant 0 : index
      %c0_19 = arith.constant 0 : index
      %23 = vector.load %arg5[%c0_18, %c0_19] : memref<128x128xf32, #tpu.memory_space<vmem>>, vector<128x128xf32>
      %cst_20 = arith.constant dense<0.000000e+00> : vector<1x128xf32>
      %24 = tpu.matmul %22, %23, %cst_20 {dimension_numbers = #tpu.dot_dimension_numbers<[1], [0], [0], [1], [0, 0, 1, 1], [], []>} : vector<1x128xf32>, vector<128x128xf32>, vector<1x128xf32> -> vector<1x128xf32>
      %c0_21 = arith.constant 0 : index
      %c0_22 = arith.constant 0 : index
      %25 = vector.load %arg6[%c0_21, %c0_22] : memref<1x128xf32, #tpu.memory_space<vmem>>, vector<1x128xf32>
      %26 = arith.addf %24, %25 : vector<1x128xf32>
      %c0_23 = arith.constant 0 : index
      %c0_24 = arith.constant 0 : index
      %c0_25 = arith.constant 0 : index
      %27 = vector.load %arg7[%c0_23, %c0_24, %c0_25] : memref<1x1x128xf32, #tpu.memory_space<vmem>>, vector<1x1x128xf32>
      %28 = vector.shape_cast %27 : vector<1x1x128xf32> to vector<1x128xf32>
      %29 = vector.shape_cast %26 : vector<1x128xf32> to vector<1x1x128xf32>
      tpu.vector_store %arg7[%c0_23, %c0_24, %c0_25], %29 {strides = array<i32>} : memref<1x1x128xf32, #tpu.memory_space<vmem>>, vector<1x1x128xf32>,
    } else {
    }
    return
  }
  func.func @transform_0(%arg0: i32, %arg1: i32) -> (i32, i32, i32) {
    %c0_i32 = arith.constant 0 : i32
    %c0_i32_0 = arith.constant 0 : i32
    return %arg0, %arg1, %c0_i32 : i32, i32, i32
  }
  func.func @transform_1(%arg0: i32, %arg1: i32) -> (i32, i32) {
    %c0_i32 = arith.constant 0 : i32
    %c0_i32_0 = arith.constant 0 : i32
    %c0_i32_1 = arith.constant 0 : i32
    return %c0_i32, %c0_i32_0 : i32, i32
  }
  func.func @transform_2(%arg0: i32, %arg1: i32) -> (i32, i32) {
    %c0_i32 = arith.constant 0 : i32
    %c0_i32_0 = arith.constant 0 : i32
    %c0_i32_1 = arith.constant 0 : i32
    return %c0_i32, %c0_i32_0 : i32, i32
  }
  func.func @transform_3(%arg0: i32, %arg1: i32) -> (i32, i32) {
    %c0_i32 = arith.constant 0 : i32
    %c0_i32_0 = arith.constant 0 : i32
    %c0_i32_1 = arith.constant 0 : i32
    return %c0_i32, %c0_i32_0 : i32, i32
  }
  func.func @transform_4(%arg0: i32, %arg1: i32) -> (i32, i32) {
    %c0_i32 = arith.constant 0 : i32
    %c0_i32_0 = arith.constant 0 : i32
    %c0_i32_1 = arith.constant 0 : i32
    return %c0_i32, %c0_i32_0 : i32, i32
  }
  func.func @transform_5(%arg0: i32, %arg1: i32) -> (i32, i32, i32) {
    %c0_i32 = arith.constant 0 : i32
    %c0_i32_0 = arith.constant 0 : i32
    %c0_i32_1 = arith.constant 0 : i32
    return %arg0, %c0_i32, %c0_i32_0 : i32, i32, i32
  }
}

</mosaic_0001>

<bundles_post_ra>
// kernel: _lambda_.1
= control target key start
LH: loop header
LB: loop body
LE: loop exit
PB: predicated region body
PF: predicated region fallthrough
CT: control target
= control target key end

     0   :  { %10 = vsyncpa [#allocation4], 0  ;;  %s1475_s0 = inlined_call_operand.vmem [shape: f32[2,256,36], index: 0, kind: input, shape index: {}]   ;;  %s1476_s1 = inlined_call_operand.vmem [shape: f32[36,128], index: 1, kind: input, shape index: {}]   ;;  %s1477_s2 = inlined_call_operand.vmem [shape: f32[1,128], index: 2, kind: input, shape index: {}]   ;;  %s1478_s3 = inlined_call_operand.vmem [shape: f32[128,128], index: 3, kind: input, shape index: {}]   ;;  %s1479_s4 = inlined_call_operand.vmem [shape: f32[1,128], index: 4, kind: input, shape index: {}]   ;;  %s1480_s5 = inlined_call_operand.hbm [shape: f32[2,1,128], index: 5, kind: output, shape index: {}]  }
   0x1   :  { %12 = vsyncpa [#allocation4 + $0x1], 0  ;;  %s1209_s18 = smov 0   ;;  %s1211_s19 = smov 0  }
   0x2   :  { %s1213_s20 = smov 0   ;;  %s1215_s21 = smov 0  }
   0x3   :  { %s1217_s22 = smov 0   ;;  %s1219_s23 = smov 0  }
   0x4   :  { %s1221_s24 = smov 0   ;;  %s1223_s25 = smov 0  }
   0x5 LB: > { %s749_s26 = sadd.s32 4294967295, %s1168_s25   ;;  %s750_s27 = sadd.s32 4294967294, %s1168_s25   ;;  %s1168_s25 = sphi %s1223_s25, %s18_s25   ;;  %s1164_s24 = sphi %s1221_s24, %s1489_s24   ;;  %s1160_s23 = sphi %s1219_s23, %s1488_s23   ;;  %s1156_s22 = sphi %s1217_s22, %s1487_s22   ;;  %s1152_s21 = sphi %s1215_s21, %s1486_s21   ;;  %s1148_s20 = sphi %s1213_s20, %s1485_s20   ;;  %s1144_s19 = sphi %s1211_s19, %s1484_s19   ;;  %s1140_s18 = sphi %s1209_s18, %s1483_s18  }
   0x6   : > { %s27_s28 = sadd.s32 1, %s1160_s23  ;;  %s30_s29 = sadd.s32 1, %s1164_s24 }
   0x7   : > { %p28_p0 = scmp.ge.s32.totalorder %s27_s28, 2  ;;  %p159_p1 = scmp.ne.s32.totalorder %s1148_s20, %s1144_s19 }
   0x8   : > { %p160_p2 = scmp.eq.s32.totalorder %s749_s26, 3  ;;  %p165_p4 = scmp.ne.s32.totalorder %s1144_s19, %s1140_s18 }
   0x9   : > { %s1491_s28 = smov (%p28_p0, %s27_s28), 0  ;;  %s1493_s29 = smov (!%p28_p0, %s30_s29), %s1164_s24 }
   0xa   : > { %p1258_p3 = por %p160_p2, %p159_p1  ;;  %p32_p5 = scmp.ge.s32.totalorder %s1493_s29, 2 }
   0xb   : > { %p166_p6 = scmp.eq.s32.totalorder %s750_s27, 3  ;;  %p753_p7 = scmp.ge.s32.totalorder %s1168_s25, 1 }
   0xc   : > { %p209_p8 = scmp.lt.s32.totalorder %s1168_s25, 5  ;;  %s1495_s29 = smov (%p32_p5, %s1493_s29), 0 }
   0xd   : > { %p1268_p9 = por %p166_p6, %p165_p4  ;;  %s146_s7 = ssub.s32 %s1164_s24, %s1495_s29 }
   0xe   : > { %p210_p10 = pnand %p753_p7, %p209_p8  ;;  %s149_s8 = sadd.s32 1, %s1148_s20 }
   0xf   : > { %p147_p11 = scmp.eq.s32.totalorder %s146_s7, 0  ;;  %s238_s10 = sand.u32 (!%p210_p10), 1, %s1144_s19  }
  0x10   : > { %213 = sbr.rel (%p210_p10) target bundleno = 757 (0x2f5), region = 40  ;;  %s754_s11 = sshll.u32 (!%p210_p10), %s1152_s21, 4 }
  0x11   : > { %s1276_s9 = scalar_select %p147_p11, %s1148_s20, %s149_s8  }
  0x12   : > { %p241_p12 = scmp.lt.s32.totalorder (!%p210_p10), %s1156_s22, 1  ;;  %p243_p13 = scmp.lt.s32.totalorder (!%p210_p10), %s754_s11, 31 }
  0x13   : > { %s1289_s27 = scalar_lea.vmem (!%p210_p10), [#allocation3], %s238_s10  ;;  %p757_p0 = scmp.ne.s32.totalorder (!%p210_p10), %s1152_s21, 0 }
  0x17   : > { %s242_s12 = scalar_select %p241_p12, %s1156_s22, 1 }
  0x18   : > { %s1497_s11 = smov (!%p243_p13, %s754_s11), 31  ;;  %253 = sbr.rel (%p757_p0) target bundleno = 31 (0x1f), region = 44 }
  0x19   : > { %s755_s13 = sshll.u32 %s242_s12, 5  ;;  %v1170_v0 = vmov (!%p757_p0), 0.0  }
  0x1a   : > { %s246_s14 = sadd.s32 %s755_s13, %s1497_s11  ;;  %254 = vst [vmem:[#allocation2] sm:$0x1] (!%p757_p0), %v1170_v0 }
  0x1b   : > { %s756_s15 = sshll.u32 %s246_s14, 3 }
  0x1c   : > { %s1285_s26 = scalar_lea.vmem %s1475_s0, %s756_s15 }
  0x1f PF: > { %v271_v1 = vld [vmem:[%s1476_s1] sm:$0xff]  ;;  %v272_v2 = vld [vmem:[%s1476_s1 + $0x8] sm:$0xff]  ;;  %v273_v3 = vld [vmem:[%s1476_s1 + $0x10] sm:$0xff]  ;;  %vm283_vm0 = vcmask 293888   ;;  %vm332_vm1 = vcmask 1043456   ;;  %v1171_v24 = vmov 0.0|0.0  }
  0x20   : > { %v939_v4 = vpack.c.bf16 %v272_v2, %v271_v1  ;;  %v274_v5 = vld [vmem:[%s1476_s1 + $0x18] sm:$0xff]  ;;  %v255_v6 = vld [vmem:[%s1285_s26] sm:$0xff]  ;;  %v256_v9 = vld [vmem:[%s1285_s26 + $0x8] sm:$0xff]  ;;  %947 = vmatprep.subr.bf16.mxu1 %v1171_v24  ;;  %vm1172_vm2 = vmmov 0   ;;  %v1173_v25 = vmov 0.0   ;;  %p776_p1 = scmp.ne.s32.totalorder %s1152_s21, 1 }
  0x21   : > { %v943_v7 = vpack.c.bf16 %v274_v5, %v273_v3  ;;  %845 = vmatprep.mubr.msk.f32.mxu0 %vm283_vm0, %v255_v6  ;;  %v275_v8 = vld [vmem:[%s1476_s1 + $0x20] sm:$0xf]  ;;  %v257_v10 = vld [vmem:[%s1285_s26 + $0x10] sm:$0xff]  ;;  %v258_v11 = vld [vmem:[%s1285_s26 + $0x18] sm:$0xff]  ;;  %901 = vmatprep.mubr.msk.f32.mxu1 %vm1172_vm2, %v1173_v25  ;;  %vm1176_vm3 = vmmov (!%p776_p1), 0  }
  0x22   : > { %940 = vmatprep.subr.bf16.mxu0 %v939_v4  ;;  %v259_v12 = vld [vmem:[%s1285_s26 + $0x20] sm:$0xff]  ;;  %v260_v13 = vld [vmem:[%s1285_s26 + $0x28] sm:$0xff]  ;;  %v261_v14 = vld [vmem:[%s1285_s26 + $0x30] sm:$0xff] }
  0x23   : > { %942 = vmatpush3.bf16.msra.mxu0 %v939_v4  ;;  %v262_v15 = vld [vmem:[%s1285_s26 + $0x38] sm:$0xff]  ;;  %v263_v16 = vld [vmem:[%s1285_s26 + $0x40] sm:$0xff]  ;;  %v264_v17 = vld [vmem:[%s1285_s26 + $0x48] sm:$0xff] }
  0x24   : > { %944 = vmatprep.subr.bf16.mxu0 %v943_v7  ;;  %v265_v18 = vld [vmem:[%s1285_s26 + $0x50] sm:$0xff]  ;;  %v266_v19 = vld [vmem:[%s1285_s26 + $0x58] sm:$0xff]  ;;  %v267_v20 = vld [vmem:[%s1285_s26 + $0x60] sm:$0xff] }
  0x25   : > { %v268_v21 = vld [vmem:[%s1285_s26 + $0x68] sm:$0xff]  ;;  %v269_v22 = vld [vmem:[%s1285_s26 + $0x70] sm:$0xff]  ;;  %v270_v23 = vld [vmem:[%s1285_s26 + $0x78] sm:$0xff] }
  0x26   : > { %v1343_v26 = vld [vmem:[%s1477_s2] ss:$0 sm:$0xff] }
  0x27   : > { %946 = vmatpush3.bf16.msra.mxu0 %v943_v7  ;;  %v576_v25 = vld [vmem:[%s1478_s3] sm:$0xff] (!%p776_p1) }
  0x28   : > { %843 = vmatprep.subr.msk.mxu0 %vm332_vm1, %v275_v8 }
  0x2b   : > { %844 = vmatpush3.msk.msra.mxu0 %vm332_vm1, %v275_v8 }
  0x2c   : > { %846 = vmatmul.mubr.msk.f32.vlgmr.msra.gmra.mrb[0].mxu0 %vm283_vm0, %v256_v9 }
  0x2d   : > { %848 = vmatprep.mubr.msk.f32.mxu0 %vm283_vm0, %v257_v10 }
  0x30   : > { %849 = vmatmul.mubr.msk.f32.gmra.mrb[2].mxu0 %vm283_vm0, %v258_v11 }
  0x31   : > { %851 = vmatprep.mubr.msk.f32.mxu0 %vm283_vm0, %v259_v12 }
  0x34   : > { %852 = vmatmul.mubr.msk.f32.gmra.mrb[4].mxu0 %vm283_vm0, %v260_v13 }
  0x35   : > { %854 = vmatprep.mubr.msk.f32.mxu0 %vm283_vm0, %v261_v14 }
  0x38   : > { %855 = vmatmul.mubr.msk.f32.gmra.mrb[6].mxu0 %vm283_vm0, %v262_v15 }
  0x39   : > { %857 = vmatprep.mubr.msk.f32.mxu0 %vm283_vm0, %v263_v16 }
  0x3c   : > { %858 = vmatmul.mubr.msk.f32.gmra.mrb[8].mxu0 %vm283_vm0, %v264_v17 }
  0x3d   : > { %860 = vmatprep.mubr.msk.f32.mxu0 %vm283_vm0, %v265_v18 }
  0x40   : > { %861 = vmatmul.mubr.msk.f32.gmra.mrb[10].mxu0 %vm283_vm0, %v266_v19  ;;  %v1174_v19 = vmov 1.0  }
  0x41   : > { %863 = vmatprep.mubr.msk.f32.mxu0 %vm283_vm0, %v267_v20  ;;  %v497_v20 = vld [vmem:[#allocation2] sm:$0x1] }
  0x44   : > { %864 = vmatmul.mubr.msk.f32.gmra.mrb[12].mxu0 %vm283_vm0, %v268_v21 }
  0x45   : > { %866 = vmatprep.mubr.msk.f32.mxu0 %vm283_vm0, %v269_v22 }
  0x48   : > { %867 = vmatmul.mubr.msk.f32.gmra.mrb[14].mxu0 %vm283_vm0, %v270_v23 }
  0xff   : > { %v847_v27 = vpop.f32.mrb[0].mxu0 }
 0x100   : > { %v408_v28 = vadd.f32 %v847_v27, %v1343_v26  ;;  %v402_v29 = vpop.f32.mrb[1].mxu0  ;;  %v1175_v27 = vmov (!%p776_p1), 0.0|0.0  }
 0x101   : > { %v403_v30 = vadd.f32 %v1343_v26, %v402_v29  ;;  %971 = vmatprep.subr.bf16.mxu0 (!%p776_p1), %v1175_v27  ;;  %v579_v29 = vld [vmem:[%s1478_s3 + $0x18] sm:$0xff] (!%p776_p1) }
 0x102   : > { %v482_v31 = vmax.f32 %v408_v28, 0.0 }
 0x103   : > { %v481_v32 = vmax.f32 %v403_v30, 0.0  ;;  %v850_v33 = vpop.f32.mrb[2].mxu0  ;;  %v1177_v30 = vmov (!%p776_p1), 0.0  }
 0x104   : > { %v418_v34 = vadd.f32 %v850_v33, %v1343_v26  ;;  %v412_v35 = vpop.f32.mrb[3].mxu0  ;;  %936 = vmatprep.mubr.msk.f32.mxu0 (!%p776_p1), %vm1176_vm3, %v1177_v30  ;;  %v581_v33 = vld [vmem:[%s1478_s3 + $0x28] sm:$0xff] (!%p776_p1) }
 0x105   : > { %v413_v36 = vadd.f32 %v1343_v26, %v412_v35  ;;  %v948_v37 = vpack.c.bf16 %v482_v31, %v481_v32  ;;  %v580_v32 = vld [vmem:[%s1478_s3 + $0x20] sm:$0xff] (!%p776_p1)  ;;  %v582_v35 = vld [vmem:[%s1478_s3 + $0x30] sm:$0xff] (!%p776_p1) }
 0x106   : > { %v484_v38 = vmax.f32 %v418_v34, 0.0  ;;  %v978_v34 = vpack.c.bf16 (!%p776_p1), %v581_v33, %v580_v32 }
 0x107   : > { %v483_v39 = vmax.f32 %v413_v36, 0.0  ;;  %v853_v40 = vpop.f32.mrb[4].mxu0  ;;  %949 = vmatpush3.bf16.msra.mxu1 %v948_v37  ;;  %v583_v36 = vld [vmem:[%s1478_s3 + $0x38] sm:$0xff] (!%p776_p1) }
 0x108   : > { %v428_v41 = vadd.f32 %v853_v40, %v1343_v26  ;;  %v422_v42 = vpop.f32.mrb[5].mxu0  ;;  %950 = vmatprep.subr.bf16.mxu1 %v1171_v24  ;;  %v981_v37 = vpack.c.bf16 (!%p776_p1), %v583_v36, %v582_v35 }
 0x109   : > { %v951_v43 = vpack.c.bf16 %v484_v38, %v483_v39  ;;  %v423_v44 = vadd.f32 %v1343_v26, %v422_v42  ;;  %v584_v38 = vld [vmem:[%s1478_s3 + $0x40] sm:$0xff] (!%p776_p1)  ;;  %v585_v39 = vld [vmem:[%s1478_s3 + $0x48] sm:$0xff] (!%p776_p1)  ;;  %v587_v42 = vld [vmem:[%s1478_s3 + $0x58] sm:$0xff] (!%p776_p1) }
 0x10a   : > { %v486_v45 = vmax.f32 %v428_v41, 0.0  ;;  %v984_v40 = vpack.c.bf16 (!%p776_p1), %v585_v39, %v584_v38  ;;  %v586_v41 = vld [vmem:[%s1478_s3 + $0x50] sm:$0xff] (!%p776_p1) }
 0x10b   : > { %v485_v46 = vmax.f32 %v423_v44, 0.0  ;;  %v856_v47 = vpop.f32.mrb[6].mxu0  ;;  %952 = vmatpush3.bf16.msra.mxu1 %v951_v43  ;;  %v987_v43 = vpack.c.bf16 (!%p776_p1), %v587_v42, %v586_v41  ;;  %v588_v44 = vld [vmem:[%s1478_s3 + $0x60] sm:$0xff] (!%p776_p1) }
 0x10c   : > { %v438_v48 = vadd.f32 %v856_v47, %v1343_v26  ;;  %v432_v49 = vpop.f32.mrb[7].mxu0  ;;  %953 = vmatprep.subr.bf16.mxu1 %v1171_v24  ;;  %v590_v47 = vld [vmem:[%s1478_s3 + $0x70] sm:$0xff] (!%p776_p1) }
 0x10d   : > { %v954_v50 = vpack.c.bf16 %v486_v45, %v485_v46  ;;  %v433_v51 = vadd.f32 %v1343_v26, %v432_v49  ;;  %v589_v45 = vld [vmem:[%s1478_s3 + $0x68] sm:$0xff] (!%p776_p1) }
 0x10e   : > { %v488_v52 = vmax.f32 %v438_v48, 0.0  ;;  %v990_v46 = vpack.c.bf16 (!%p776_p1), %v589_v45, %v588_v44  ;;  %v591_v48 = vld [vmem:[%s1478_s3 + $0x78] sm:$0xff] (!%p776_p1) }
 0x10f   : > { %v487_v53 = vmax.f32 %v433_v51, 0.0  ;;  %v859_v54 = vpop.f32.mrb[8].mxu0  ;;  %955 = vmatpush3.bf16.msra.mxu1 %v954_v50  ;;  %v993_v49 = vpack.c.bf16 (!%p776_p1), %v591_v48, %v590_v47 }
 0x110   : > { %v448_v55 = vadd.f32 %v859_v54, %v1343_v26  ;;  %v442_v56 = vpop.f32.mrb[9].mxu0  ;;  %956 = vmatprep.subr.bf16.mxu1 %v1171_v24 }
 0x111   : > { %v957_v57 = vpack.c.bf16 %v488_v52, %v487_v53  ;;  %v443_v58 = vadd.f32 %v1343_v26, %v442_v56  ;;  %v592_v52 = vld [vmem:[%s1479_s4] sm:$0x1] (!%p776_p1) }
 0x112   : > { %v490_v59 = vmax.f32 %v448_v55, 0.0 }
 0x113   : > { %v489_v60 = vmax.f32 %v443_v58, 0.0  ;;  %v862_v61 = vpop.f32.mrb[10].mxu0  ;;  %958 = vmatpush3.bf16.msra.mxu1 %v957_v57 }
 0x114   : > { %v458_v62 = vadd.f32 %v862_v61, %v1343_v26  ;;  %v452_v63 = vpop.f32.mrb[11].mxu0  ;;  %959 = vmatprep.subr.bf16.mxu1 %v1171_v24 }
 0x115   : > { %v960_v0 = vpack.c.bf16 %v490_v59, %v489_v60  ;;  %v453_v1 = vadd.f32 %v1343_v26, %v452_v63 }
 0x116   : > { %v492_v2 = vmax.f32 %v458_v62, 0.0 }
 0x117   : > { %v491_v3 = vmax.f32 %v453_v1, 0.0  ;;  %v865_v4 = vpop.f32.mrb[12].mxu0  ;;  %961 = vmatpush3.bf16.msra.mxu1 %v960_v0 }
 0x118   : > { %v468_v5 = vadd.f32 %v865_v4, %v1343_v26  ;;  %v462_v6 = vpop.f32.mrb[13].mxu0  ;;  %962 = vmatprep.subr.bf16.mxu1 %v1171_v24 }
 0x119   : > { %v963_v7 = vpack.c.bf16 %v492_v2, %v491_v3  ;;  %v463_v8 = vadd.f32 %v1343_v26, %v462_v6 }
 0x11a   : > { %v494_v9 = vmax.f32 %v468_v5, 0.0 }
 0x11b   : > { %v493_v10 = vmax.f32 %v463_v8, 0.0  ;;  %v868_v11 = vpop.f32.mrb[14].mxu0  ;;  %964 = vmatpush3.bf16.msra.mxu1 %v963_v7 }
 0x11c   : > { %v478_v12 = vadd.f32 %v868_v11, %v1343_v26  ;;  %v472_v13 = vpop.f32.mrb[15].mxu0  ;;  %965 = vmatprep.subr.bf16.mxu1 %v1171_v24 }
 0x11d   : > { %v966_v14 = vpack.c.bf16 %v494_v9, %v493_v10  ;;  %v473_v15 = vadd.f32 %v1343_v26, %v472_v13  ;;  %v578_v26 = vld [vmem:[%s1478_s3 + $0x10] sm:$0xff] (!%p776_p1) }
 0x11e   : > { %v496_v16 = vmax.f32 %v478_v12, 0.0  ;;  %v975_v31 = vpack.c.bf16 (!%p776_p1), %v579_v29, %v578_v26 }
 0x11f   : > { %v495_v17 = vmax.f32 %v473_v15, 0.0  ;;  %967 = vmatpush3.bf16.msra.mxu1 %v966_v14 }
 0x120   : > { %968 = vmatprep.subr.bf16.mxu1 %v1171_v24  ;;  %v577_v24 = vld [vmem:[%s1478_s3 + $0x8] sm:$0xff] (!%p776_p1) }
 0x121   : > { %v969_v18 = vpack.c.bf16 %v496_v16, %v495_v17  ;;  %v972_v28 = vpack.c.bf16 (!%p776_p1), %v577_v24, %v576_v25 }
 0x123   : > { %970 = vmatpush3.bf16.msra.mxu1 %v969_v18  ;;  %973 = vmatpush3.bf16.msra.mxu0 (!%p776_p1), %v972_v28 }
 0x124   : > { %974 = vmatprep.subr.bf16.mxu0 (!%p776_p1), %v1175_v27 }
 0x126   : > { %902 = vmatmul.mubr.f32.vlgmr.msra.gmra.mrb[0].mxu1 %v1174_v19 }
 0x127   : > { %976 = vmatpush3.bf16.msra.mxu0 (!%p776_p1), %v975_v31 }
 0x128   : > { %977 = vmatprep.subr.bf16.mxu0 (!%p776_p1), %v1175_v27 }
 0x12b   : > { %979 = vmatpush3.bf16.msra.mxu0 (!%p776_p1), %v978_v34 }
 0x12c   : > { %980 = vmatprep.subr.bf16.mxu0 (!%p776_p1), %v1175_v27 }
 0x12f   : > { %982 = vmatpush3.bf16.msra.mxu0 (!%p776_p1), %v981_v37 }
 0x130   : > { %983 = vmatprep.subr.bf16.mxu0 (!%p776_p1), %v1175_v27 }
 0x133   : > { %985 = vmatpush3.bf16.msra.mxu0 (!%p776_p1), %v984_v40 }
 0x134   : > { %986 = vmatprep.subr.bf16.mxu0 (!%p776_p1), %v1175_v27 }
 0x137   : > { %988 = vmatpush3.bf16.msra.mxu0 (!%p776_p1), %v987_v43 }
 0x138   : > { %989 = vmatprep.subr.bf16.mxu0 (!%p776_p1), %v1175_v27 }
 0x13b   : > { %991 = vmatpush3.bf16.msra.mxu0 (!%p776_p1), %v990_v46 }
 0x13c   : > { %992 = vmatprep.subr.bf16.mxu0 (!%p776_p1), %v1175_v27 }
 0x13f   : > { %994 = vmatpush3.bf16.msra.mxu0 (!%p776_p1), %v993_v49 }
 0x1f6   : > { %573 = sbr.rel (%p776_p1) target bundleno = 733 (0x2dd), region = 48 }
 0x1f9   : > { %v564_v21 = vpop.f32.mrb[0].mxu1 }
 0x1fa   : > { %v568_v22 = vadd.f32 %v564_v21, %v497_v20  ;;  %v903_v23 = vpop.f32.mrb[1].mxu1 }
 0x1fc   : > { %569 = vst [vmem:[#allocation2] sm:$0x1] %v568_v22 }
 0x203   : > { %v574_v50 = vld [vmem:[#allocation2] sm:$0x1] }
 0x204   : > { %v575_v51 = vmul.f32 0.00390625, %v574_v50 }
 0x206   : > { %937 = vmatmul.mubr.f32.vlgmr.msra.gmra.mrb[0].mxu0 %v575_v51 }
 0x2d9   : > { %v659_v53 = vpop.f32.mrb[0].mxu0 }
 0x2da   : > { %v660_v54 = vadd.f32 %v659_v53, %v592_v52  ;;  %v938_v55 = vpop.f32.mrb[1].mxu0 }
 0x2dc   : > { %663 = vst [vmem:[%s1289_s27] sm:$0x1] %v660_v54 }
 0x2dd PF: > { %s777_s12 = sshll.u32 %s1156_s22, 4  ;;  %s677_s16 = sshll.u32 %s1289_s27, 4  ;;  %s678_s16 = int_to_ptr.vmem [resolvable:$true] %s677_s16 }
 0x2de   : > { %s1425_s15 = scalar_lea.hbm %s1480_s5, %s777_s12  ;;  %s665_s17 = scalar_lea.sflag [#allocation4], %s238_s10 }
 0x2df   : > { %s1074_s7 = scalar_lea.vmem %s678_s16, 16  ;;  %s1178_s21 = smov [#allocation3]  }
 0x2e0   : > { %p1075_p2 = scmp.ne.s32.totalorder %s678_s16, %s1074_s7  ;;  %s1078_s8 = sshll.u32 %s1178_s21, 4  ;;  %s1079_s8 = int_to_ptr.vmem [resolvable:$false] %s1078_s8 }
 0x2e1   : > { %s1080_s11 = scalar_lea.vmem %s1079_s8, 32  ;;  %p1081_p6 = scmp.lt.s32.totalorder %s678_s16, %s1079_s8 }
 0x2e2   : > { %p1076_p4 = pnand %p1075_p2, %p1258_p3  ;;  %p1082_p7 = scmp.lt.s32.totalorder %s1080_s11, %s1074_s7 }
 0x2e4   : > { %p1077_p5 = pneg %p1076_p4  ;;  %p1083_p8 = por %p1082_p7, %p1081_p6 }
 0x2e6   : > { %p1084_p10 = pnand %p1083_p8, %p1077_p5 }
 0x2e8   : > { %1087 = shalt.err (!%p1084_p10)
}
 0x2e9   : > { %s1088_s22 = scalar_lea.hbm %s1425_s15, 16  ;;  %s1092_s26 = scalar_lea.hbm %s1480_s5, 32 }
 0x2ea   : > { %p1089_p11 = scmp.ne.s32.totalorder %s1425_s15, %s1088_s22  ;;  %p1093_p0 = scmp.lt.u32.totalorder %s1425_s15, %s1480_s5 }
 0x2eb   : > { %p1094_p1 = scmp.lt.u32.totalorder %s1092_s26, %s1088_s22  ;;  %p1096_p4 = scmp.lt.u32.totalorder %s1088_s22, %s1425_s15 }
 0x2ec   : > { %p1090_p12 = pnand %p1089_p11, %p1258_p3 }
 0x2ed   : > { %p1095_p2 = por %p1094_p1, %p1093_p0 }
 0x2ee   : > { %p1091_p13 = pneg %p1090_p12 }
 0x2ef   : > { %p1097_p5 = por %p1096_p4, %p1095_p2 }
 0x2f1   : > { %p1098_p6 = pnand %p1097_p5, %p1091_p13 }
 0x2f3   : > { %1101 = shalt.err (!%p1098_p6)
}
 0x2f4   : > { %995 = dma.vmem_to_hbm [thread:$0]  (%p1258_p3), %s678_s16, 16, %s1425_s15, %s665_s17  }
 0x2f5 PF: > { %p1001_p7 = scmp.ge.s32.totalorder %s1168_s25, 2  ;;  %s689_s14 = sand.u32 1, %s1140_s18  }
 0x2f6   : > { %s690_s7 = scalar_lea.sflag [#allocation4], %s689_s14 }
 0x2f7   : > { %p998_p8 = pnand %p1001_p7, %p1268_p9 }
 0x2f9   : > { %1135 = dma.done.wait (!%p998_p8), %s690_s7, 16  }
 0x2fa   : > { %1137 = vsyncadd (!%p998_p8), %s690_s7, 4294967280  ;;  %s18_s25 = sadd.s32 1, %s1168_s25   ;;  %s1483_s18 = smov %s1144_s19 }
 0x2fb   : > { %p15_p10 = scmp.ge.s32.totalorder %s18_s25, 6   ;;  %s1484_s19 = smov %s1148_s20 }
 0x2fc   : > { %s1485_s20 = smov %s1276_s9  ;;  %s1486_s21 = smov %s1160_s23 }
 0x2fd   : > { %s1487_s22 = smov %s1164_s24  ;;  %s1488_s23 = smov %s1491_s28 }
 0x2fe   : > { %s1489_s24 = smov %s1495_s29  ;;  %17 = sbr.rel (!%p15_p10) target bundleno = 5 (0x5), region = 83 }
 0x305   :  { %694 = vsyncpa [#allocation4], 1 }
 0x306   :  { %696 = vsyncpa [#allocation4 + $0x1], 1 }

</bundles_post_ra>
